<compile_context>
chip_gen: v5e
topology: v5e:2x2
jax: 0.10.0
libtpu: 0.0.40
codegen_flags: <defaults>
</compile_context>

<pallas_src>
import functools

import jax
import jax.numpy as jnp
from jax.experimental import pallas as pl
from jax.experimental.pallas import tpu as pltpu

NUM_CLASSES = 101


def _round_up(x, m):
    return (x + m - 1) // m * m


def _cpad(c):
    return _round_up(max(c, 128), 128)


def _pick_div(dim, prefs):
    for p in prefs:
        if p <= dim and dim % p == 0:
            return p
    return dim


def _tile_rows(total, cap):
    """Split `total` rows into k tiles of size tm (multiple of 8, ~<= cap), minimal padding."""
    total = max(total, 8)
    k = max(1, -(-total // cap))
    tm = _round_up(-(-total // k), 8)
    return tm, k * tm


# ----------------------------------------------------------------------------
# Pallas kernels
# ----------------------------------------------------------------------------

def _gemm_bias_act_kernel(x_ref, w_ref, b_ref, o_ref, acc_ref, *, relu):
    @pl.when(pl.program_id(2) == 0)
    def _init():
        acc_ref[...] = jnp.zeros_like(acc_ref)

    acc_ref[...] += jnp.dot(x_ref[...], w_ref[...],
                            preferred_element_type=jnp.float32)

    @pl.when(pl.program_id(2) == pl.num_programs(2) - 1)
    def _finish():
        r = acc_ref[...] + b_ref[...]
        if relu:
            r = jnp.maximum(r, 0.0)
        o_ref[...] = r.astype(o_ref.dtype)


def _gemm_bias_res_act_kernel(x_ref, w_ref, b_ref, res_ref, o_ref, acc_ref, *, relu):
    @pl.when(pl.program_id(2) == 0)
    def _init():
        acc_ref[...] = jnp.zeros_like(acc_ref)

    acc_ref[...] += jnp.dot(x_ref[...], w_ref[...],
                            preferred_element_type=jnp.float32)

    @pl.when(pl.program_id(2) == pl.num_programs(2) - 1)
    def _finish():
        r = acc_ref[...] + b_ref[...] + res_ref[...].astype(jnp.float32)
        if relu:
            r = jnp.maximum(r, 0.0)
        o_ref[...] = r.astype(o_ref.dtype)


def _conv3x3_band_kernel(x_ref, w_ref, b_ref, o_ref, *, wp, tm, relu):
    # x_ref: (1, rows, Cin) bf16 flattened zero-padded image (whole image; its block index
    #        only changes with the batch axis so it is DMA'd once per image).
    # w_ref: (9, Cin, tc) bf16 (cout tile)   b_ref: (1, tc) f32   o_ref: (1, tm, tc) bf16.
    # The 9 taps are row windows at static offsets d = dh*wp + dw of the row tile; bf16 is
    # sliced directly from the ref and fed to the MXU with f32 accumulation (no casts).
    row0 = pl.multiple_of(pl.program_id(2) * tm, 8)
    tc = o_ref.shape[-1]
    acc = jnp.zeros((tm, tc), jnp.float32)
    for t in range(9):
        d = (t // 3) * wp + (t % 3)
        xs = x_ref[0, pl.ds(row0 + d, tm), :]
        acc = acc + jnp.dot(xs, w_ref[t], preferred_element_type=jnp.float32)
    acc = acc + b_ref[...]
    if relu:
        acc = jnp.maximum(acc, 0.0)
    o_ref[0] = acc.astype(o_ref.dtype)


def _maxpool_band_kernel(x_ref, o_ref, *, wp, tm):
    # Running max over the 9 statically shifted row windows (stride-1 3x3 max map), bf16.
    row0 = pl.multiple_of(pl.program_id(1) * tm, 8)
    r = x_ref[0, pl.ds(row0, tm), :]
    for t in range(1, 9):
        d = (t // 3) * wp + (t % 3)
        r = jnp.maximum(r, x_ref[0, pl.ds(row0 + d, tm), :])
    o_ref[0] = r


# ----------------------------------------------------------------------------
# Pallas wrappers
# ----------------------------------------------------------------------------

def pallas_gemm(x, w, bias, residual=None, relu=True, out_dtype=jnp.bfloat16):
    """out = act(x @ w + bias [+ residual]).  x:(M,K), w:(K,N) bf16, bias:(1,N) f32."""
    M, K = x.shape
    Kw, Np = w.shape
    assert K == Kw and K % 128 == 0 and Np % 128 == 0

    tm, Mp = _tile_rows(M, 512)

    x = x.astype(jnp.bfloat16)
    if residual is not None:
        residual = residual.astype(jnp.bfloat16)
    if Mp != M:                                   # rare tail-padding path (tiny M only)
        x = jnp.pad(x, ((0, Mp - M), (0, 0)))
        if residual is not None:
            residual = jnp.pad(residual, ((0, Mp - M), (0, 0)))

    tn = _pick_div(Np, (512, 256, 128))
    tk = K if K <= 1024 else _pick_div(K, (1024, 512, 384, 256, 128))
    grid = (Mp // tm, Np // tn, K // tk)

    in_specs = [pl.BlockSpec((tm, tk), lambda i, j, k: (i, k)),
                pl.BlockSpec((tk, tn), lambda i, j, k: (k, j)),
                pl.BlockSpec((1, tn), lambda i, j, k: (0, j))]
    args = [x, w, bias]
    if residual is None:
        kern = functools.partial(_gemm_bias_act_kernel, relu=relu)
    else:
        in_specs.append(pl.BlockSpec((tm, tn), lambda i, j, k: (i, j)))
        args.append(residual)
        kern = functools.partial(_gemm_bias_res_act_kernel, relu=relu)

    out = pl.pallas_call(
        kern,
        grid=grid,
        in_specs=in_specs,
        out_specs=pl.BlockSpec((tm, tn), lambda i, j, k: (i, j)),
        out_shape=jax.ShapeDtypeStruct((Mp, Np), out_dtype),
        scratch_shapes=[pltpu.VMEM((tm, tn), jnp.float32)],
        compiler_params=pltpu.CompilerParams(
            dimension_semantics=("parallel", "parallel", "arbitrary")),
    )(*args)
    return out[:M] if Mp != M else out


def conv1x1_bn(x, wmat, bias, stride=1, relu=True, residual=None):
    """1x1 conv (+ folded BN shift, optional residual, ReLU) as a channel GEMM."""
    if stride > 1:
        x = x[:, ::stride, ::stride, :]
    N, H, W, C = x.shape
    res2d = None if residual is None else residual.reshape(N * H * W, residual.shape[-1])
    out = pallas_gemm(x.reshape(N * H * W, C), wmat, bias, residual=res2d, relu=relu)
    return out.reshape(N, H, W, wmat.shape[1])


def _band_pad(x, wp, mout_pad):
    """One fused jnp.pad: 1-wide spatial halo plus enough extra bottom rows so the flattened
    (rows, C) image covers mout_pad + 2*wp + 2 source rows."""
    N, H, W, C = x.shape
    need = mout_pad + 2 * wp + 2
    base = (H + 2) * wp
    eh = max(0, -(-(need - base) // wp))
    rows = (H + 2 + eh) * wp
    xp = jnp.pad(x, ((0, 0), (1, 1 + eh), (1, 1), (0, 0)))
    return xp.reshape(N, rows, C), rows


def conv3x3_bn_relu(x, w9, bias, stride=1):
    """3x3 conv (pad 1) + folded BN shift + ReLU.
    stride 1 -> banded direct-conv kernel; stride 2 -> im2col GEMM on the strided output grid."""
    N, H, W, C = x.shape
    coutp = w9.shape[-1]
    x = x.astype(jnp.bfloat16)

    if stride != 1:
        Ho = (H - 1) // stride + 1
        Wo = (W - 1) // stride + 1
        xp = jnp.pad(x, ((0, 0), (1, 1), (1, 1), (0, 0)))
        cols = [xp[:, dh:dh + stride * Ho:stride, dw:dw + stride * Wo:stride, :]
                for dh in range(3) for dw in range(3)]
        patches = jnp.concatenate(cols, axis=-1).reshape(N * Ho * Wo, 9 * C)
        out = pallas_gemm(patches, w9.reshape(9 * C, coutp), bias, relu=True)
        return out.reshape(N, Ho, Wo, coutp)

    wp = W + 2
    mout = H * wp
    tm, mout_pad = _tile_rows(mout, 512)
    xpad, rows = _band_pad(x, wp, mout_pad)
    tc = _pick_div(coutp, (256, 128))          # cout tiling keeps the weight block small
    grid = (N, coutp // tc, mout_pad // tm)
    band = pl.pallas_call(
        functools.partial(_conv3x3_band_kernel, wp=wp, tm=tm, relu=True),
        grid=grid,
        in_specs=[pl.BlockSpec((1, rows, C), lambda n, c, m: (n, 0, 0)),
                  pl.BlockSpec((9, C, tc), lambda n, c, m: (0, 0, c)),
                  pl.BlockSpec((1, tc), lambda n, c, m: (0, c))],
        out_specs=pl.BlockSpec((1, tm, tc), lambda n, c, m: (n, m, c)),
        out_shape=jax.ShapeDtypeStruct((N, mout_pad, coutp), jnp.bfloat16),
        compiler_params=pltpu.CompilerParams(
            dimension_semantics=("parallel", "parallel", "parallel")),
    )(xpad, w9, bias)
    # TODO(synk): the 2 trailing halo columns per band row are trimmed with one slice here;
    # folding the trim into the kernel store would need a non-uniform scatter.
    out = band[:, :mout, :].reshape(N, H, wp, coutp)[:, :, :W, :]
    return out


def maxpool_3x3_s2(x):
    """MaxPool2d(kernel=3, stride=2, padding=1).  Input is post-ReLU (>=0) so zero-padding
    is equivalent to -inf padding."""
    N, H, W, C = x.shape
    wp = W + 2
    mout = H * wp
    tm, mout_pad = _tile_rows(mout, 1024)
    xpad, rows = _band_pad(x, wp, mout_pad)
    band = pl.pallas_call(
        functools.partial(_maxpool_band_kernel, wp=wp, tm=tm),
        grid=(N, mout_pad // tm),
        in_specs=[pl.BlockSpec((1, rows, C), lambda n, m: (n, 0, 0))],
        out_specs=pl.BlockSpec((1, tm, C), lambda n, m: (n, m, 0)),
        out_shape=jax.ShapeDtypeStruct((N, mout_pad, C), x.dtype),
        compiler_params=pltpu.CompilerParams(
            dimension_semantics=("parallel", "parallel")),
    )(xpad)
    out = band[:, :mout, :].reshape(N, H, wp, C)[:, :, :W, :]
    # TODO(synk): the stride-1 max map is still subsampled here (extra compute on this one layer).
    return out[:, ::2, ::2, :]


def stem_conv(x, p):
    """7x7 stride-2 pad-3 conv + folded BN + ReLU (small 3-channel im2col GEMM)."""
    N, H, W, C = x.shape
    kh = kw = 7
    s, pad = 2, 3
    Ho = (H + 2 * pad - kh) // s + 1
    Wo = (W + 2 * pad - kw) // s + 1
    xp = jnp.pad(x, ((0, 0), (pad, pad), (pad, pad), (0, 0))).astype(jnp.bfloat16)
    cols = [xp[:, i:i + s * Ho:s, j:j + s * Wo:s, :]
            for i in range(kh) for j in range(kw)]
    patches = jnp.concatenate(cols, axis=-1).reshape(N * Ho * Wo, kh * kw * C)
    kp = p["w"].shape[0]
    if patches.shape[1] < kp:
        # TODO(synk): K is zero-padded 147->256 for the MXU; a banded 49-tap kernel would
        # avoid the pad waste on this single stem layer.
        patches = jnp.pad(patches, ((0, 0), (0, kp - patches.shape[1])))
    out = pallas_gemm(patches, p["w"], p["b"], relu=True)
    return out.reshape(N, Ho, Wo, p["w"].shape[1])


# ----------------------------------------------------------------------------
# Parameter construction (deterministic, synthetic, BN-folded, pre-padded, bf16)
# ----------------------------------------------------------------------------

def _bn_fold(key, cout, eps=1e-5):
    k1, k2, k3, k4 = jax.random.split(key, 4)
    gamma = 1.0 + 0.1 * jax.random.normal(k1, (cout,), jnp.float32)
    beta = 0.1 * jax.random.normal(k2, (cout,), jnp.float32)
    mean = 0.1 * jax.random.normal(k3, (cout,), jnp.float32)
    var = 1.0 + 0.1 * jax.random.uniform(k4, (cout,), jnp.float32)
    scale = gamma / jnp.sqrt(var + eps)
    shift = beta - mean * scale
    return scale, shift


def _make_conv1x1(key, cin, cout):
    kw_, kb = jax.random.split(key)
    w = jax.random.normal(kw_, (cin, cout), jnp.float32) * (2.0 / cin) ** 0.5
    scale, shift = _bn_fold(kb, cout)
    cinp, coutp = _cpad(cin), _cpad(cout)
    wmat = jnp.zeros((cinp, coutp), jnp.float32).at[:cin, :cout].set(w * scale[None, :])
    bias = jnp.zeros((1, coutp), jnp.float32).at[0, :cout].set(shift)
    return {"w": wmat.astype(jnp.bfloat16), "b": bias}


def _make_conv3x3(key, cin, cout):
    kw_, kb = jax.random.split(key)
    w = jax.random.normal(kw_, (3, 3, cin, cout), jnp.float32) * (2.0 / (9 * cin)) ** 0.5
    scale, shift = _bn_fold(kb, cout)
    cinp, coutp = _cpad(cin), _cpad(cout)
    w9 = jnp.zeros((9, cinp, coutp), jnp.float32)
    w9 = w9.at[:, :cin, :cout].set((w * scale).reshape(9, cin, cout))
    bias = jnp.zeros((1, coutp), jnp.float32).at[0, :cout].set(shift)
    return {"w": w9.astype(jnp.bfloat16), "b": bias}


def _make_stem(key, cin, cout=64):
    kw_, kb = jax.random.split(key)
    w = jax.random.normal(kw_, (7, 7, cin, cout), jnp.float32) * (2.0 / (49 * cin)) ** 0.5
    scale, shift = _bn_fold(kb, cout)
    k_log = 49 * cin
    kp, coutp = _round_up(k_log, 128), _cpad(cout)
    wmat = jnp.zeros((kp, coutp), jnp.float32)
    wmat = wmat.at[:k_log, :cout].set((w * scale).reshape(k_log, cout))
    bias = jnp.zeros((1, coutp), jnp.float32).at[0, :cout].set(shift)
    return {"w": wmat.astype(jnp.bfloat16), "b": bias}


def _make_bottleneck(key, inplanes, planes, downsample):
    ks = jax.random.split(key, 4)
    p = {"conv1": _make_conv1x1(ks[0], inplanes, planes),
         "conv2": _make_conv3x3(ks[1], planes, planes),
         "conv3": _make_conv1x1(ks[2], planes, planes * 4)}
    if downsample:
        p["down"] = _make_conv1x1(ks[3], inplanes, planes * 4)
    return p


def make_resnet_twostream_params(key, in_channels=3, num_classes=NUM_CLASSES,
                                 layers=(3, 4, 23, 3)):
    """ResNet-101 (level=101) bottleneck backbone parameters."""
    keys = iter(jax.random.split(key, 64))
    params = {"conv1": _make_stem(next(keys), in_channels, 64)}
    inplanes = 64
    planes_list = (64, 128, 256, 512)
    strides = (1, 2, 2, 2)
    for li, (planes, nblocks, stride) in enumerate(zip(planes_list, layers, strides)):
        blocks = []
        for b in range(nblocks):
            s = stride if b == 0 else 1
            down = (b == 0) and (s != 1 or inplanes != planes * 4)
            blocks.append(_make_bottleneck(next(keys), inplanes, planes, down))
            inplanes = planes * 4
        params["layer%d" % (li + 1)] = blocks
    kfc_w, kfc_b = jax.random.split(next(keys))
    cfc = _cpad(num_classes)
    fc_w = jax.random.normal(kfc_w, (512 * 4, num_classes), jnp.float32) * (1.0 / 2048.0) ** 0.5
    fc_b = 0.01 * jax.random.normal(kfc_b, (num_classes,), jnp.float32)
    params["fc_w"] = jnp.zeros((512 * 4, cfc), jnp.float32).at[:, :num_classes].set(fc_w).astype(jnp.bfloat16)
    params["fc_b"] = jnp.zeros((1, cfc), jnp.float32).at[0, :num_classes].set(fc_b)
    return params


# ----------------------------------------------------------------------------
# Forward pass
# ----------------------------------------------------------------------------

def _bottleneck_forward(x, p, stride):
    if "down" in p:
        identity = conv1x1_bn(x, p["down"]["w"], p["down"]["b"], stride=stride, relu=False)
    else:
        identity = x
    out = conv1x1_bn(x, p["conv1"]["w"], p["conv1"]["b"], relu=True)
    out = conv3x3_bn_relu(out, p["conv2"]["w"], p["conv2"]["b"], stride=stride)
    # conv3 + folded BN + residual add + ReLU fused in one GEMM kernel
    out = conv1x1_bn(out, p["conv3"]["w"], p["conv3"]["b"], relu=True, residual=identity)
    return out


def resnet_twostream_forward(params, x_nchw):
    """x_nchw: (N, C, H, W) float32 -> logits (N, 101)."""
    x = jnp.transpose(x_nchw, (0, 2, 3, 1)).astype(jnp.float32)   # NCHW -> NHWC
    x = stem_conv(x, params["conv1"])
    x = maxpool_3x3_s2(x)
    strides = (1, 2, 2, 2)
    for li in range(4):
        for bi, blk in enumerate(params["layer%d" % (li + 1)]):
            x = _bottleneck_forward(x, blk, strides[li] if bi == 0 else 1)
    # TODO(synk): torchvision-era resnet uses nn.AvgPool2d(7) which assumes 224x224 input;
    # a global average pool is used here so small spatial sizes work.
    pooled = jnp.mean(x.astype(jnp.float32), axis=(1, 2))          # (N, 2048)
    logits = pallas_gemm(pooled, params["fc_w"], params["fc_b"],
                         relu=False, out_dtype=jnp.float32)
    return logits[:, :NUM_CLASSES]


# ----------------------------------------------------------------------------
# Main
# ----------------------------------------------------------------------------

if __name__ == "__main__":
    key = jax.random.PRNGKey(0)
    kparams, kx = jax.random.split(key)

    in_channels = 3
    batch, height, width = 2, 64, 64   # small but survives all 5 stride-2 stages

    params = make_resnet_twostream_params(kparams, in_channels=in_channels,
                                          num_classes=NUM_CLASSES, layers=(3, 4, 23, 3))
    x = jax.random.normal(kx, (batch, in_channels, height, width), jnp.float32)

    logits = resnet_twostream_forward(params, x)
    logits = jax.block_until_ready(logits)

    assert logits.shape == (batch, NUM_CLASSES), logits.shape
    assert bool(jnp.all(jnp.isfinite(logits)))
    print("KERNEL_OK")
</pallas_src>

<mosaic_0001>
module attributes {stable_mosaic.version = 11 : i64} {
  func.func @_gemm_bias_act_kernel(%arg0: i32, %arg1: i32, %arg2: i32, %arg3: memref<512x256xbf16, #tpu.memory_space<vmem>>, %arg4: memref<256x128xbf16, #tpu.memory_space<vmem>>, %arg5: memref<1x128xf32, #tpu.memory_space<vmem>>, %arg6: memref<512x128xbf16, #tpu.memory_space<vmem>>, %arg7: memref<512x128xf32, #tpu.memory_space<vmem>>) attributes {dimension_semantics = [#tpu.dimension_semantics<parallel>, #tpu.dimension_semantics<parallel>, #tpu.dimension_semantics<arbitrary>], iteration_bounds = array<i64: 4, 1, 1>, scalar_prefetch = 0 : i64, scratch_operands = 1 : i64, tpu.core_type = #tpu.core_type<tc>, window_params = [{transform_indices = @transform_0, window_bounds = array<i64: 512, 256>}, {transform_indices = @transform_1, window_bounds = array<i64: 256, 128>}, {transform_indices = @transform_2, window_bounds = array<i64: 1, 128>}, {transform_indices = @transform_3, window_bounds = array<i64: 512, 128>}]} {
    %c0_i32 = arith.constant 0 : i32
    %0 = arith.cmpi eq, %arg2, %c0_i32 : i32
    %1 = arith.extui %0 : i1 to i32
    %c0_i32_0 = arith.constant 0 : i32
    %2 = arith.cmpi ne, %1, %c0_i32_0 : i32
    scf.if %2 {
      %cst_10 = arith.constant 0.000000e+00 : f32
      %12 = vector.broadcast %cst_10 : f32 to vector<512x128xf32>
      %c0_11 = arith.constant 0 : index
      %c0_12 = arith.constant 0 : index
      %13 = vector.load %arg7[%c0_11, %c0_12] : memref<512x128xf32, #tpu.memory_space<vmem>>, vector<512x128xf32>
      tpu.vector_store %arg7[%c0_11, %c0_12], %12 {strides = array<i32>} : memref<512x128xf32, #tpu.memory_space<vmem>>, vector<512x128xf32>,
    } else {
    }
    %c0 = arith.constant 0 : index
    %c0_1 = arith.constant 0 : index
    %3 = vector.load %arg7[%c0, %c0_1] : memref<512x128xf32, #tpu.memory_space<vmem>>, vector<512x128xf32>
    %c0_2 = arith.constant 0 : index
    %c0_3 = arith.constant 0 : index
    %4 = vector.load %arg3[%c0_2, %c0_3] : memref<512x256xbf16, #tpu.memory_space<vmem>>, vector<512x256xbf16>
    %c0_4 = arith.constant 0 : index
    %c0_5 = arith.constant 0 : index
    %5 = vector.load %arg4[%c0_4, %c0_5] : memref<256x128xbf16, #tpu.memory_space<vmem>>, vector<256x128xbf16>
    %cst = arith.constant dense<0.000000e+00> : vector<512x128xf32>
    %6 = tpu.matmul %4, %5, %cst {dimension_numbers = #tpu.dot_dimension_numbers<[1], [0], [0], [1], [0, 0, 1, 1], [], []>} : vector<512x256xbf16>, vector<256x128xbf16>, vector<512x128xf32> -> vector<512x128xf32>
    %7 = arith.addf %3, %6 : vector<512x128xf32>
    %c0_6 = arith.constant 0 : index
    %c0_7 = arith.constant 0 : index
    %8 = vector.load %arg7[%c0_6, %c0_7] : memref<512x128xf32, #tpu.memory_space<vmem>>, vector<512x128xf32>
    tpu.vector_store %arg7[%c0_6, %c0_7], %7 {strides = array<i32>} : memref<512x128xf32, #tpu.memory_space<vmem>>, vector<512x128xf32>,
    %c0_i32_8 = arith.constant 0 : i32
    %9 = arith.cmpi eq, %arg2, %c0_i32_8 : i32
    %10 = arith.extui %9 : i1 to i32
    %c0_i32_9 = arith.constant 0 : i32
    %11 = arith.cmpi ne, %10, %c0_i32_9 : i32
    scf.if %11 {
      %c0_10 = arith.constant 0 : index
      %c0_11 = arith.constant 0 : index
      %12 = vector.load %arg7[%c0_10, %c0_11] : memref<512x128xf32, #tpu.memory_space<vmem>>, vector<512x128xf32>
      %c0_12 = arith.constant 0 : index
      %c0_13 = arith.constant 0 : index
      %13 = vector.load %arg5[%c0_12, %c0_13] : memref<1x128xf32, #tpu.memory_space<vmem>>, vector<1x128xf32>
      %14 = vector.broadcast %13 : vector<1x128xf32> to vector<512x128xf32>
      %15 = arith.addf %12, %14 : vector<512x128xf32>
      %cst_14 = arith.constant 0.000000e+00 : f32
      %16 = vector.broadcast %cst_14 : f32 to vector<512x128xf32>
      %17 = arith.maximumf %15, %16 : vector<512x128xf32>
      %18 = arith.truncf %17 : vector<512x128xf32> to vector<512x128xbf16>
      %c0_15 = arith.constant 0 : index
      %c0_16 = arith.constant 0 : index
      %19 = vector.load %arg6[%c0_15, %c0_16] : memref<512x128xbf16, #tpu.memory_space<vmem>>, vector<512x128xbf16>
      tpu.vector_store %arg6[%c0_15, %c0_16], %18 {strides = array<i32>} : memref<512x128xbf16, #tpu.memory_space<vmem>>, vector<512x128xbf16>,
    } else {
    }
    return
  }
  func.func @transform_0(%arg0: i32, %arg1: i32, %arg2: i32) -> (i32, i32) {
    %c0_i32 = arith.constant 0 : i32
    return %arg0, %arg2 : i32, i32
  }
  func.func @transform_1(%arg0: i32, %arg1: i32, %arg2: i32) -> (i32, i32) {
    %c0_i32 = arith.constant 0 : i32
    return %arg2, %arg1 : i32, i32
  }
  func.func @transform_2(%arg0: i32, %arg1: i32, %arg2: i32) -> (i32, i32) {
    %c0_i32 = arith.constant 0 : i32
    %c0_i32_0 = arith.constant 0 : i32
    return %c0_i32, %arg1 : i32, i32
  }
  func.func @transform_3(%arg0: i32, %arg1: i32, %arg2: i32) -> (i32, i32) {
    %c0_i32 = arith.constant 0 : i32
    return %arg0, %arg1 : i32, i32
  }
}

</mosaic_0001>

<bundles_post_ra>
// kernel: tpu_custom_call.1
= control target key start
LH: loop header
LB: loop body
LE: loop exit
PB: predicated region body
PF: predicated region fallthrough
CT: control target
= control target key end

     0   :  { %s3098_s0 = inlined_call_operand.hbm [shape: bf16[2048,256], index: 0, kind: input, shape index: {}]   ;;  %s3099_s1 = inlined_call_operand.hbm [shape: bf16[256,128], index: 1, kind: input, shape index: {}]   ;;  %s3100_s2 = inlined_call_operand.vmem [shape: f32[1,128], index: 2, kind: input, shape index: {}]   ;;  %s3101_s3 = inlined_call_operand.hbm [shape: bf16[2048,128], index: 3, kind: output, shape index: {}]  }
   0x1   :  { %3102 = sst [smem:[#allocation12_spill]] %s3099_s1 }
   0x2   :  { %8 = vsyncpa [#allocation4], 0 }
   0x3   :  { %10 = vsyncpa [#allocation4 + $0x1], 0 }
   0x4   :  { %11 = vsyncpa [#allocation7], 0 }
   0x5   :  { %12 = vsyncpa [#allocation5], 0 }
   0x6   :  { %14 = vsyncpa [#allocation5 + $0x1], 0  ;;  %s2716_s12 = smov 0   ;;  %s2718_s13 = smov 0  }
   0x7   :  { %s2720_s14 = smov 0   ;;  %s2722_s15 = smov 0  }
   0x8   :  { %s2724_s16 = smov 0   ;;  %s2726_s17 = smov 0  }
   0x9 LB: > { %s1832_s18 = sadd.s32 4294967295, %s2687_s17   ;;  %s1833_s19 = sadd.s32 4294967294, %s2687_s17   ;;  %s2687_s17 = sphi %s2726_s17, %s20_s17   ;;  %s2683_s16 = sphi %s2724_s16, %s3115_s16   ;;  %s2679_s15 = sphi %s2722_s15, %s3114_s15   ;;  %s2675_s14 = sphi %s2720_s14, %s3113_s14   ;;  %s2671_s13 = sphi %s2718_s13, %s3112_s13   ;;  %s2667_s12 = sphi %s2716_s12, %s3111_s12  }
   0xa   : > { %p61_p0 = scmp.ne.s32.totalorder %s2671_s13, %s2667_s12  ;;  %p2750_p1 = scmp.eq.s32.totalorder %s1832_s18, 0 }
   0xb   : > { %p2754_p2 = scmp.eq.s32.totalorder %s1832_s18, 3  ;;  %p147_p3 = scmp.eq.s32.totalorder %s1833_s19, 3 }
   0xc   : > { %p2760_p4 = por %p2750_p1, %p61_p0  ;;  %p1834_p5 = scmp.ge.s32.totalorder %s2687_s17, 1 }
   0xd   : > { %p2765_p6 = por %p147_p3, %p61_p0  ;;  %p154_p7 = scmp.lt.s32.totalorder %s2687_s17, 5 }
   0xe   : > { %s3107_s1 = sld [smem:[#allocation12_spill]]  ;;  %s2689_s28 = smov [#allocation6]  }
   0xf   : > { %p2773_p8 = pnand %p1834_p5, %p154_p7  ;;  %s171_s29 = sshll.u32 %s2689_s28, 4  ;;  %s172_s29 = int_to_ptr.vmem [resolvable:$true] %s171_s29 }
  0x10   : > { %s2690_s30 = smov 64   ;;  %s2691_s4 = smov 4  }
  0x11   : > { %p2469_p9 = pneg %p2773_p8  ;;  %s39_s5 = sadd.s32 1, %s2683_s16 }
  0x12   : > { %p41_p11 = scmp.ge.s32.totalorder %s39_s5, 4  ;;  %s48_s6 = sadd.s32 1, %s2675_s14 }
  0x13   : > { %p2470_p10 = pnand %p2469_p9, %p2750_p1  ;;  %p55_p12 = scmp.ne.s32.totalorder %s2675_s14, %s2671_s13 }
  0x14   : > { %s169_s26 = sshll.u32 %s3107_s1, 4  ;;  %p56_p13 = scmp.eq.s32.totalorder %s2687_s17, 0  ;;  %s170_s26 = int_to_ptr.hbm [resolvable:$true] %s169_s26 }
  0x15   : > { %2472 = dma.hbm_to_vmem [thread:$0]  (!%p2470_p10), %s170_s26, 2048, %s172_s29, [#allocation7], %s2690_s30, %s2690_s30, %s2691_s4  }
  0x16   : > { %s3117_s5 = smov (%p41_p11, %s39_s5), 0  ;;  %p2788_p0 = por %p56_p13, %p55_p12 }
  0x17   : > { %p2794_p3 = por %p2754_p2, %p55_p12  ;;  %s43_s9 = ssub.s32 %s2683_s16, %s3117_s5 }
  0x18   : > { %p2482_p5 = scmp.lt.s32.totalorder %s2687_s17, 4  ;;  %p46_p7 = scmp.eq.s32.totalorder %s43_s9, 0 }
  0x19   : > { %s191_s10 = sand.u32 1, %s2675_s14   ;;  %s2172_s19 = sshll.u32 %s2683_s16, 9 }
  0x1a   : > { %s1838_s11 = sshll.u32 %s191_s10, 9  ;;  %s203_s26 = scalar_lea.hbm %s3098_s0, %s2172_s19 }
  0x1b   : > { %s2803_s18 = scalar_select %p46_p7, %s2675_s14, %s48_s6  }
  0x1c   : > { %s195_s28 = scalar_lea.vmem [#allocation3], %s1838_s11  ;;  %s204_s21 = sshll.u32 %s203_s26, 4  ;;  %s205_s21 = int_to_ptr.hbm [resolvable:$true] %s204_s21 }
  0x1d   : > { %s206_s29 = sshll.u32 %s195_s28, 4  ;;  %p2474_p2 = pnand %p2482_p5, %p2788_p0  ;;  %s207_s29 = int_to_ptr.vmem [resolvable:$true] %s206_s29 }
  0x1e   : > { %s192_s30 = scalar_lea.sflag [#allocation4], %s191_s10  ;;  %s2692_s4 = smov 128  }
  0x1f   : > { %s2693_s1 = smov 8   ;;  %218 = sbr.rel (%p2773_p8) target bundleno = 464 (0x1d0), region = 32 }
  0x20   : > { %2476 = dma.hbm_to_vmem [thread:$0]  (!%p2474_p2), %s205_s21, 8192, %s207_s29, %s192_s30, %s2692_s4, %s2692_s4, %s2693_s1  }
  0x21   : > { %s2814_s6 = sand.u32 (!%p2773_p8), 1, %s2671_s13  }
  0x22   : > { %s1843_s9 = sshll.u32 (!%p2773_p8), %s2814_s6, 9  ;;  %s221_s11 = scalar_lea.sflag (!%p2773_p8), [#allocation4], %s2814_s6 }
  0x23   : > { %s2818_s19 = scalar_lea.vmem (!%p2773_p8), [#allocation3], %s1843_s9 }
  0x24   : > { %2654 = dma.done.wait (%p2760_p4), %s221_s11, 8192  }
  0x25   : > { %2656 = vsyncadd (%p2760_p4), %s221_s11, 4294959104 }
  0x26   : > { %2658 = dma.done.wait (%p2750_p1), [#allocation7], 2048  }
  0x27   : > { %2660 = vsyncadd (%p2750_p1), [#allocation7], 4294965248  ;;  %v2244_v0 = vld [vmem:[#allocation6 + $0x38] sm:$0xff]  ;;  %v2243_v2 = vld [vmem:[#allocation6 + $0x30] sm:$0xff]  ;;  %s1845_s22 = sshll.u32 %s2814_s6, 8  ;;  %s2253_s7 = sshll.u32 %s2679_s15, 8 }
  0x28   : > { %v2252_v1 = vld [vmem:[#allocation6 + $0x78] sm:$0xff]  ;;  %907 = vmatpush.bf16.msra.mxu0 %v2244_v0  ;;  %2445 = vmatpush.bf16.msra.mxu2 %v2244_v0  ;;  %v2251_v3 = vld [vmem:[#allocation6 + $0x70] sm:$0xff]  ;;  %v2242_v4 = vld [vmem:[#allocation6 + $0x28] sm:$0xff]  ;;  %s2917_s27 = scalar_lea.vmem [#allocation8], %s1845_s22  ;;  %s1713_s25 = scalar_lea.hbm %s3101_s3, %s2253_s7 }
  0x29   : > { %1076 = vmatpush.bf16.msra.mxu1 %v2252_v1  ;;  %2453 = vmatpush.bf16.msra.mxu3 %v2252_v1  ;;  %v2250_v5 = vld [vmem:[#allocation6 + $0x68] sm:$0xff]  ;;  %v2241_v6 = vld [vmem:[#allocation6 + $0x20] sm:$0xff]  ;;  %v2240_v8 = vld [vmem:[#allocation6 + $0x18] sm:$0xff]  ;;  %s1714_s26 = sshll.u32 %s2917_s27, 4  ;;  %s1716_s15 = sshll.u32 %s1713_s25, 4  ;;  %s1715_s26 = int_to_ptr.vmem [resolvable:$true] %s1714_s26  ;;  %s1717_s15 = int_to_ptr.hbm [resolvable:$true] %s1716_s15 }
  0x2a   : > { %v2249_v7 = vld [vmem:[#allocation6 + $0x60] sm:$0xff]  ;;  %v2248_v9 = vld [vmem:[#allocation6 + $0x58] sm:$0xff]  ;;  %v2239_v10 = vld [vmem:[#allocation6 + $0x10] sm:$0xff]  ;;  %s1701_s28 = scalar_lea.sflag [#allocation5], %s2814_s6  ;;  %s2615_s29 = sshra.s32 %s1717_s15, 4  ;;  %s2616_s29 = int_to_ptr.hbm [resolvable:$true] %s2615_s29 }
  0x2b   : > { %v2247_v11 = vld [vmem:[#allocation6 + $0x50] sm:$0xff]  ;;  %v2238_v12 = vld [vmem:[#allocation6 + $0x8] sm:$0xff]  ;;  %v2237_v14 = vld [vmem:[#allocation6] sm:$0xff]  ;;  %s2617_s21 = scalar_lea.hbm %s2616_s29, 256  ;;  %s2621_s9 = scalar_lea.hbm %s3101_s3, 1024 }
  0x2c   : > { %908 = vmatpush.bf16.msra.mxu0 %v2243_v2  ;;  %2446 = vmatpush.bf16.msra.mxu2 %v2243_v2  ;;  %v2246_v13 = vld [vmem:[#allocation6 + $0x48] sm:$0xff]  ;;  %v2245_v15 = vld [vmem:[#allocation6 + $0x40] sm:$0xff]  ;;  %v1856_v28 = vld [vmem:[%s2818_s19 + $0x10] sm:$0xf]  ;;  %p2618_p1 = scmp.ne.s32.totalorder %s2616_s29, %s2617_s21  ;;  %p2622_p9 = scmp.lt.s32.totalorder %s2616_s29, %s3101_s3 }
  0x2d   : > { %1077 = vmatpush.bf16.msra.mxu1 %v2251_v3  ;;  %2454 = vmatpush.bf16.msra.mxu3 %v2251_v3  ;;  %v1848_v16 = vld [vmem:[%s2818_s19] sm:$0xf]  ;;  %v2174_v17 = vld [vmem:[%s2818_s19 + $0x4] sm:$0xf0]  ;;  %v2173_v20 = vld [vmem:[%s2818_s19 + $0x4] sm:$0xf]  ;;  %p2623_p10 = scmp.lt.s32.totalorder %s2621_s9, %s2617_s21 }
  0x2e   : > { %v1976_v18 = vld [vmem:[%s2818_s19 + $0x100] sm:$0xf]  ;;  %v2206_v19 = vld [vmem:[%s2818_s19 + $0x104] sm:$0xf0]  ;;  %v1850_v21 = vld [vmem:[%s2818_s19 + $0x8] sm:$0xf0]  ;;  %v1849_v24 = vor.u32 %v2174_v17, %v1848_v16  ;;  %p2619_p4 = pnand %p2618_p1, %p2794_p3 }
  0x2f   : > { %v2205_v22 = vld [vmem:[%s2818_s19 + $0x104] sm:$0xf]  ;;  %v1978_v23 = vld [vmem:[%s2818_s19 + $0x108] sm:$0xf0]  ;;  %v1977_v25 = vor.u32 %v2206_v19, %v1976_v18  ;;  %v1853_v26 = vor.u32 %v2173_v20, %v1850_v21  ;;  %v2176_v29 = vld [vmem:[%s2818_s19 + $0x14] sm:$0xf0]  ;;  %p2624_p11 = por %p2623_p10, %p2622_p9 }
  0x30   : > { %909 = vmatpush.bf16.msra.mxu0 %v2242_v4  ;;  %2447 = vmatpush.bf16.msra.mxu2 %v2242_v4  ;;  %v1981_v27 = vor.u32 %v2205_v22, %v1978_v23  ;;  %v1984_v30 = vld [vmem:[%s2818_s19 + $0x110] sm:$0xf]  ;;  %v2208_v31 = vld [vmem:[%s2818_s19 + $0x114] sm:$0xf0]  ;;  %v2175_v32 = vld [vmem:[%s2818_s19 + $0x14] sm:$0xf]  ;;  %v1857_v36 = vor.u32 %v2176_v29, %v1856_v28  ;;  %p2620_p8 = pneg %p2619_p4 }
  0x31   : > { %1078 = vmatpush.bf16.msra.mxu1 %v2250_v5  ;;  %2455 = vmatpush.bf16.msra.mxu3 %v2250_v5  ;;  %v1858_v33 = vld [vmem:[%s2818_s19 + $0x18] sm:$0xf0]  ;;  %v2207_v34 = vld [vmem:[%s2818_s19 + $0x114] sm:$0xf]  ;;  %v1985_v37 = vor.u32 %v2208_v31, %v1984_v30  ;;  %v1864_v40 = vld [vmem:[%s2818_s19 + $0x20] sm:$0xf] }
  0x32   : > { %v1986_v35 = vld [vmem:[%s2818_s19 + $0x118] sm:$0xf0]  ;;  %v1861_v38 = vor.u32 %v2175_v32, %v1858_v33  ;;  %v2178_v41 = vld [vmem:[%s2818_s19 + $0x24] sm:$0xf0]  ;;  %v1992_v42 = vld [vmem:[%s2818_s19 + $0x120] sm:$0xf]  ;;  %p2625_p12 = pnand %p2624_p11, %p2620_p8 }
  0x33   : > { %v1989_v39 = vor.u32 %v2207_v34, %v1986_v35  ;;  %v2210_v43 = vld [vmem:[%s2818_s19 + $0x124] sm:$0xf0]  ;;  %v2177_v44 = vld [vmem:[%s2818_s19 + $0x24] sm:$0xf]  ;;  %v1866_v45 = vld [vmem:[%s2818_s19 + $0x28] sm:$0xf0]  ;;  %v1865_v48 = vor.u32 %v2178_v41, %v1864_v40 }
  0x34   : > { %910 = vmatpush.bf16.msra.mxu0 %v2241_v6  ;;  %2448 = vmatpush.bf16.msra.mxu2 %v2241_v6  ;;  %v2209_v46 = vld [vmem:[%s2818_s19 + $0x124] sm:$0xf]  ;;  %v1994_v47 = vld [vmem:[%s2818_s19 + $0x128] sm:$0xf0]  ;;  %v1993_v49 = vor.u32 %v2210_v43, %v1992_v42  ;;  %v1869_v50 = vor.u32 %v2177_v44, %v1866_v45  ;;  %v1872_v52 = vld [vmem:[%s2818_s19 + $0x30] sm:$0xf] }
  0x35   : > { %1079 = vmatpush.bf16.msra.mxu1 %v2249_v7  ;;  %2456 = vmatpush.bf16.msra.mxu3 %v2249_v7  ;;  %v1997_v51 = vor.u32 %v2209_v46, %v1994_v47  ;;  %v2180_v53 = vld [vmem:[%s2818_s19 + $0x34] sm:$0xf0]  ;;  %v2000_v54 = vld [vmem:[%s2818_s19 + $0x130] sm:$0xf]  ;;  %v2179_v56 = vld [vmem:[%s2818_s19 + $0x34] sm:$0xf] }
  0x36   : > { %v2212_v55 = vld [vmem:[%s2818_s19 + $0x134] sm:$0xf0]  ;;  %v1874_v57 = vld [vmem:[%s2818_s19 + $0x38] sm:$0xf0]  ;;  %v2211_v58 = vld [vmem:[%s2818_s19 + $0x134] sm:$0xf]  ;;  %v1873_v60 = vor.u32 %v2180_v53, %v1872_v52 }
  0x37   : > { %v2002_v59 = vld [vmem:[%s2818_s19 + $0x138] sm:$0xf0]  ;;  %v2001_v61 = vor.u32 %v2212_v55, %v2000_v54  ;;  %v1877_v62 = vor.u32 %v2179_v56, %v1874_v57  ;;  %v1880_v0 = vld [vmem:[%s2818_s19 + $0x40] sm:$0xf]  ;;  %v2182_v1 = vld [vmem:[%s2818_s19 + $0x44] sm:$0xf0] }
  0x38   : > { %911 = vmatpush.bf16.msra.mxu0 %v2240_v8  ;;  %2449 = vmatpush.bf16.msra.mxu2 %v2240_v8  ;;  %v2005_v63 = vor.u32 %v2211_v58, %v2002_v59  ;;  %v2008_v2 = vld [vmem:[%s2818_s19 + $0x140] sm:$0xf]  ;;  %v2214_v3 = vld [vmem:[%s2818_s19 + $0x144] sm:$0xf0]  ;;  %v2181_v4 = vld [vmem:[%s2818_s19 + $0x44] sm:$0xf]  ;;  %v1881_v8 = vor.u32 %v2182_v1, %v1880_v0 }
  0x39   : > { %1080 = vmatpush.bf16.msra.mxu1 %v2248_v9  ;;  %2457 = vmatpush.bf16.msra.mxu3 %v2248_v9  ;;  %v1882_v5 = vld [vmem:[%s2818_s19 + $0x48] sm:$0xf0]  ;;  %v2213_v6 = vld [vmem:[%s2818_s19 + $0x144] sm:$0xf]  ;;  %v2009_v9 = vor.u32 %v2214_v3, %v2008_v2  ;;  %v2183_v16 = vld [vmem:[%s2818_s19 + $0x54] sm:$0xf] }
  0x3a   : > { %v2010_v7 = vld [vmem:[%s2818_s19 + $0x148] sm:$0xf0]  ;;  %v1890_v17 = vld [vmem:[%s2818_s19 + $0x58] sm:$0xf0]  ;;  %v2215_v18 = vld [vmem:[%s2818_s19 + $0x154] sm:$0xf] }
  0x3b   : > { %v2018_v19 = vld [vmem:[%s2818_s19 + $0x158] sm:$0xf0]  ;;  %v1893_v22 = vor.u32 %v2183_v16, %v1890_v17  ;;  %v2185_v28 = vld [vmem:[%s2818_s19 + $0x64] sm:$0xf]  ;;  %v1898_v29 = vld [vmem:[%s2818_s19 + $0x68] sm:$0xf0] }
  0x3c   : > { %912 = vmatpush.bf16.msra.mxu0 %v2239_v10  ;;  %2450 = vmatpush.bf16.msra.mxu2 %v2239_v10  ;;  %v1885_v10 = vor.u32 %v2181_v4, %v1882_v5  ;;  %v2021_v23 = vor.u32 %v2215_v18, %v2018_v19  ;;  %v2217_v30 = vld [vmem:[%s2818_s19 + $0x164] sm:$0xf]  ;;  %v2026_v31 = vld [vmem:[%s2818_s19 + $0x168] sm:$0xf0]  ;;  %v1901_v34 = vor.u32 %v2185_v28, %v1898_v29  ;;  %v2187_v40 = vld [vmem:[%s2818_s19 + $0x74] sm:$0xf] }
  0x3d   : > { %1081 = vmatpush.bf16.msra.mxu1 %v2247_v11  ;;  %2458 = vmatpush.bf16.msra.mxu3 %v2247_v11  ;;  %v2013_v11 = vor.u32 %v2213_v6, %v2010_v7  ;;  %v2029_v35 = vor.u32 %v2217_v30, %v2026_v31  ;;  %v1906_v41 = vld [vmem:[%s2818_s19 + $0x78] sm:$0xf0]  ;;  %v2219_v42 = vld [vmem:[%s2818_s19 + $0x174] sm:$0xf]  ;;  %v2189_v52 = vld [vmem:[%s2818_s19 + $0x84] sm:$0xf] }
  0x3e   : > { %v2034_v43 = vld [vmem:[%s2818_s19 + $0x178] sm:$0xf0]  ;;  %v1909_v46 = vor.u32 %v2187_v40, %v1906_v41  ;;  %v1914_v53 = vld [vmem:[%s2818_s19 + $0x88] sm:$0xf0]  ;;  %v2221_v54 = vld [vmem:[%s2818_s19 + $0x184] sm:$0xf] }
  0x3f   : > { %v2037_v47 = vor.u32 %v2219_v42, %v2034_v43  ;;  %v2042_v55 = vld [vmem:[%s2818_s19 + $0x188] sm:$0xf0]  ;;  %v1917_v59 = vor.u32 %v2189_v52, %v1914_v53  ;;  %v1920_v6 = vld [vmem:[%s2818_s19 + $0x90] sm:$0xf]  ;;  %v2192_v7 = vld [vmem:[%s2818_s19 + $0x94] sm:$0xf0] }
  0x40   : > { %913 = vmatpush.bf16.msra.mxu0 %v2238_v12  ;;  %2451 = vmatpush.bf16.msra.mxu2 %v2238_v12  ;;  %v1888_v12 = vld [vmem:[%s2818_s19 + $0x50] sm:$0xf]  ;;  %v1928_v40 = vld [vmem:[%s2818_s19 + $0xa0] sm:$0xf]  ;;  %v2194_v41 = vld [vmem:[%s2818_s19 + $0xa4] sm:$0xf0] }
  0x41   : > { %1082 = vmatpush.bf16.msra.mxu1 %v2246_v13  ;;  %2459 = vmatpush.bf16.msra.mxu3 %v2246_v13  ;;  %v2184_v13 = vld [vmem:[%s2818_s19 + $0x54] sm:$0xf0]  ;;  %v2056_v42 = vld [vmem:[%s2818_s19 + $0x1a0] sm:$0xf] }
  0x42   : > { %v1889_v20 = vor.u32 %v2184_v13, %v1888_v12  ;;  %v2191_v12 = vld [vmem:[%s2818_s19 + $0x94] sm:$0xf]  ;;  %v1922_v13 = vld [vmem:[%s2818_s19 + $0x98] sm:$0xf0] }
  0x44   : > { %914 = vmatpush.bf16.msra.mxu0 %v2237_v14  ;;  %2452 = vmatpush.bf16.msra.mxu2 %v2237_v14  ;;  %v2016_v14 = vld [vmem:[%s2818_s19 + $0x150] sm:$0xf] }
  0x45   : > { %1083 = vmatpush.bf16.msra.mxu1 %v2245_v15  ;;  %2460 = vmatpush.bf16.msra.mxu3 %v2245_v15  ;;  %v2216_v15 = vld [vmem:[%s2818_s19 + $0x154] sm:$0xf0] }
  0x46   : > { %v2017_v21 = vor.u32 %v2216_v15, %v2016_v14  ;;  %v2223_v14 = vld [vmem:[%s2818_s19 + $0x194] sm:$0xf]  ;;  %v2050_v15 = vld [vmem:[%s2818_s19 + $0x198] sm:$0xf0] }
  0x47   : > { %915 = vmatmul.bf16.vlgmr.msra.gmra.mxu0 %v1849_v24  ;;  %995 = vmatmul.bf16.vlgmr.msra.gmra.mxu2 %v1977_v25  ;;  %v1896_v24 = vld [vmem:[%s2818_s19 + $0x60] sm:$0xf]  ;;  %v2186_v25 = vld [vmem:[%s2818_s19 + $0x64] sm:$0xf0] }
  0x48   : > { %1084 = vmatmul.bf16.vlgmr.msra.gmra.mxu1 %v1853_v26  ;;  %1164 = vmatmul.bf16.vlgmr.msra.gmra.mxu3 %v1981_v27  ;;  %v2024_v26 = vld [vmem:[%s2818_s19 + $0x160] sm:$0xf]  ;;  %v2218_v27 = vld [vmem:[%s2818_s19 + $0x164] sm:$0xf0]  ;;  %v1897_v32 = vor.u32 %v2186_v25, %v1896_v24 }
  0x49   : > { %v2025_v33 = vor.u32 %v2218_v27, %v2024_v26  ;;  %v2053_v27 = vor.u32 %v2223_v14, %v2050_v15 }
  0x57   : > { %920 = vmatmul.bf16.gmra.mxu0 %v1857_v36  ;;  %1000 = vmatmul.bf16.gmra.mxu2 %v1985_v37  ;;  %v1904_v36 = vld [vmem:[%s2818_s19 + $0x70] sm:$0xf]  ;;  %v2188_v37 = vld [vmem:[%s2818_s19 + $0x74] sm:$0xf0] }
  0x58   : > { %1089 = vmatmul.bf16.gmra.mxu1 %v1861_v38  ;;  %1169 = vmatmul.bf16.gmra.mxu3 %v1989_v39  ;;  %v2032_v38 = vld [vmem:[%s2818_s19 + $0x170] sm:$0xf]  ;;  %v2220_v39 = vld [vmem:[%s2818_s19 + $0x174] sm:$0xf0]  ;;  %v1905_v44 = vor.u32 %v2188_v37, %v1904_v36 }
  0x59   : > { %v2033_v45 = vor.u32 %v2220_v39, %v2032_v38 }
  0x67   : > { %925 = vmatmul.bf16.gmra.mxu0 %v1865_v48  ;;  %1005 = vmatmul.bf16.gmra.mxu2 %v1993_v49  ;;  %v1912_v48 = vld [vmem:[%s2818_s19 + $0x80] sm:$0xf]  ;;  %v2190_v49 = vld [vmem:[%s2818_s19 + $0x84] sm:$0xf0] }
  0x68   : > { %1094 = vmatmul.bf16.gmra.mxu1 %v1869_v50  ;;  %1174 = vmatmul.bf16.gmra.mxu3 %v1997_v51  ;;  %v2040_v50 = vld [vmem:[%s2818_s19 + $0x180] sm:$0xf]  ;;  %v2222_v51 = vld [vmem:[%s2818_s19 + $0x184] sm:$0xf0]  ;;  %v1913_v56 = vor.u32 %v2190_v49, %v1912_v48  ;;  %v2225_v48 = vld [vmem:[%s2818_s19 + $0x1a4] sm:$0xf] }
  0x69   : > { %v2041_v57 = vor.u32 %v2222_v51, %v2040_v50  ;;  %v2058_v49 = vld [vmem:[%s2818_s19 + $0x1a8] sm:$0xf0] }
  0x77   : > { %930 = vmatmul.bf16.gmra.mxu0 %v1873_v60  ;;  %1010 = vmatmul.bf16.gmra.mxu2 %v2001_v61  ;;  %v2045_v60 = vor.u32 %v2221_v54, %v2042_v55  ;;  %v1929_v54 = vor.u32 %v2194_v41, %v1928_v40 }
  0x78   : > { %1099 = vmatmul.bf16.gmra.mxu1 %v1877_v62  ;;  %1179 = vmatmul.bf16.gmra.mxu3 %v2005_v63  ;;  %v2903_v63 = vld [vmem:[%s3100_s2] ss:$0 sm:$0xff] }
  0x87   : > { %935 = vmatmul.bf16.gmra.mxu0 %v1881_v8  ;;  %1015 = vmatmul.bf16.gmra.mxu2 %v2009_v9  ;;  %v2048_v8 = vld [vmem:[%s2818_s19 + $0x190] sm:$0xf] }
  0x88   : > { %1104 = vmatmul.bf16.gmra.mxu1 %v1885_v10  ;;  %1184 = vmatmul.bf16.gmra.mxu3 %v2013_v11  ;;  %v2224_v11 = vld [vmem:[%s2818_s19 + $0x194] sm:$0xf0] }
  0x97   : > { %940 = vmatmul.bf16.gmra.mxu0 %v1889_v20  ;;  %1020 = vmatmul.bf16.gmra.mxu2 %v2017_v21  ;;  %v1921_v20 = vor.u32 %v2192_v7, %v1920_v6  ;;  %v2049_v21 = vor.u32 %v2224_v11, %v2048_v8  ;;  %v1936_v11 = vld [vmem:[%s2818_s19 + $0xb0] sm:$0xf] }
  0x98   : > { %1109 = vmatmul.bf16.gmra.mxu1 %v1893_v22  ;;  %1189 = vmatmul.bf16.gmra.mxu3 %v2021_v23  ;;  %v1925_v22 = vor.u32 %v2191_v12, %v1922_v13  ;;  %v2196_v12 = vld [vmem:[%s2818_s19 + $0xb4] sm:$0xf0]  ;;  %v2064_v13 = vld [vmem:[%s2818_s19 + $0x1b0] sm:$0xf] }
  0xa7   : > { %945 = vmatmul.bf16.gmra.mxu0 %v1897_v32  ;;  %1025 = vmatmul.bf16.gmra.mxu2 %v2025_v33 }
  0xa8   : > { %1114 = vmatmul.bf16.gmra.mxu1 %v1901_v34  ;;  %1194 = vmatmul.bf16.gmra.mxu3 %v2029_v35 }
  0xb7   : > { %950 = vmatmul.bf16.gmra.mxu0 %v1905_v44  ;;  %1030 = vmatmul.bf16.gmra.mxu2 %v2033_v45  ;;  %v2226_v45 = vld [vmem:[%s2818_s19 + $0x1a4] sm:$0xf0] }
  0xb8   : > { %1119 = vmatmul.bf16.gmra.mxu1 %v1909_v46  ;;  %1199 = vmatmul.bf16.gmra.mxu3 %v2037_v47  ;;  %v2193_v46 = vld [vmem:[%s2818_s19 + $0xa4] sm:$0xf]  ;;  %v1930_v47 = vld [vmem:[%s2818_s19 + $0xa8] sm:$0xf0]  ;;  %v2057_v55 = vor.u32 %v2226_v45, %v2056_v42  ;;  %v1944_v45 = vld [vmem:[%s2818_s19 + $0xc0] sm:$0xf] }
  0xc4   : > { %v916_v58 = vpop.f32.mrf.mxu0 }
  0xc5   : > { %v1085_v61 = vpop.f32.mrf.mxu1 }
  0xc6   : > { %v1086_v62 = vadd.f32 %v1085_v61, %v916_v58  ;;  %v2061_v61 = vor.u32 %v2225_v48, %v2058_v49 }
  0xc7   : > { %955 = vmatmul.bf16.gmra.mxu0 %v1913_v56  ;;  %1035 = vmatmul.bf16.gmra.mxu2 %v2041_v57  ;;  %v1933_v56 = vor.u32 %v2193_v46, %v1930_v47  ;;  %v2198_v46 = vld [vmem:[%s2818_s19 + $0xc4] sm:$0xf0]  ;;  %v2072_v47 = vld [vmem:[%s2818_s19 + $0x1c0] sm:$0xf] }
  0xc8   : > { %1124 = vmatmul.bf16.gmra.mxu1 %v1917_v59  ;;  %1204 = vmatmul.bf16.gmra.mxu3 %v2045_v60  ;;  %v1444_v4 = vadd.f32 %v2903_v63, %v1086_v62 }
  0xca   : > { %v996_v0 = vpop.f32.mrf.mxu2  ;;  %v1508_v16 = vmax.f32 %v1444_v4, 0.0 }
  0xcb   : > { %v1165_v1 = vpop.f32.mrf.mxu3 }
  0xcc   : > { %v918_v2 = vpop.f32.mrf.mxu0  ;;  %v1166_v9 = vadd.f32 %v1165_v1, %v996_v0 }
  0xcd   : > { %v1087_v3 = vpop.f32.mrf.mxu1 }
  0xce   : > { %v1088_v5 = vadd.f32 %v1087_v3, %v918_v2  ;;  %v1476_v23 = vadd.f32 %v2903_v63, %v1166_v9 }
  0xd0   : > { %v1445_v10 = vadd.f32 %v2903_v63, %v1088_v5  ;;  %v1540_v30 = vmax.f32 %v1476_v23, 0.0 }
  0xd2   : > { %v1509_v17 = vmax.f32 %v1445_v10, 0.0  ;;  %v998_v18 = vpop.f32.mrf.mxu2 }
  0xd3   : > { %v1167_v19 = vpop.f32.mrf.mxu3 }
  0xd4   : > { %v2257_v24 = vpack.c.bf16 %v1509_v17, %v1508_v16  ;;  %v1168_v25 = vadd.f32 %v1167_v19, %v998_v18  ;;  %v921_v26 = vpop.f32.mrf.mxu0  ;;  %v2228_v16 = vld [vmem:[%s2818_s19 + $0x1b4] sm:$0xf0]  ;;  %v2195_v17 = vld [vmem:[%s2818_s19 + $0xb4] sm:$0xf]  ;;  %v1938_v18 = vld [vmem:[%s2818_s19 + $0xb8] sm:$0xf0] }
  0xd5   : > { %v1090_v28 = vpop.f32.mrf.mxu1  ;;  %v2227_v19 = vld [vmem:[%s2818_s19 + $0x1b4] sm:$0xf] }
  0xd6   : > { %2258 = vst [vmem:[%s2917_s27] sm:$0xff] %v2257_v24   ;;  %v1477_v29 = vadd.f32 %v2903_v63, %v1168_v25  ;;  %v1091_v33 = vadd.f32 %v1090_v28, %v921_v26  ;;  %v1937_v25 = vor.u32 %v2196_v12, %v1936_v11  ;;  %v2065_v26 = vor.u32 %v2228_v16, %v2064_v13  ;;  %v1952_v16 = vld [vmem:[%s2818_s19 + $0xd0] sm:$0xf] }
  0xd7   : > { %960 = vmatmul.bf16.gmra.mxu0 %v1921_v20  ;;  %1040 = vmatmul.bf16.gmra.mxu2 %v2049_v21  ;;  %v2066_v20 = vld [vmem:[%s2818_s19 + $0x1b8] sm:$0xf0] }
  0xd8   : > { %v1541_v31 = vmax.f32 %v1477_v29, 0.0  ;;  %1129 = vmatmul.bf16.gmra.mxu1 %v1925_v22  ;;  %1209 = vmatmul.bf16.gmra.mxu3 %v2053_v27  ;;  %v1446_v38 = vadd.f32 %v2903_v63, %v1091_v33  ;;  %v1941_v27 = vor.u32 %v2195_v17, %v1938_v18  ;;  %v2200_v17 = vld [vmem:[%s2818_s19 + $0xd4] sm:$0xf0]  ;;  %v2080_v18 = vld [vmem:[%s2818_s19 + $0x1d0] sm:$0xf] }
  0xda   : > { %v2337_v32 = vpack.c.bf16 %v1541_v31, %v1540_v30  ;;  %v1001_v34 = vpop.f32.mrf.mxu2  ;;  %v1510_v50 = vmax.f32 %v1446_v38, 0.0 }
  0xdb   : > { %v1170_v35 = vpop.f32.mrf.mxu3 }
  0xdc   : > { %2429 = vst [vmem:[%s2917_s27 + $0x80] sm:$0xff] %v2337_v32   ;;  %v923_v36 = vpop.f32.mrf.mxu0  ;;  %v1171_v43 = vadd.f32 %v1170_v35, %v1001_v34  ;;  %v2069_v32 = vor.u32 %v2227_v19, %v2066_v20 }
  0xdd   : > { %v1092_v37 = vpop.f32.mrf.mxu1 }
  0xde   : > { %v1093_v39 = vadd.f32 %v1092_v37, %v923_v36  ;;  %v1478_v57 = vadd.f32 %v2903_v63, %v1171_v43 }
  0xe0   : > { %v1447_v44 = vadd.f32 %v2903_v63, %v1093_v39  ;;  %v1542_v1 = vmax.f32 %v1478_v57, 0.0 }
  0xe2   : > { %v1511_v51 = vmax.f32 %v1447_v44, 0.0  ;;  %v1003_v52 = vpop.f32.mrf.mxu2 }
  0xe3   : > { %v1172_v53 = vpop.f32.mrf.mxu3 }
  0xe4   : > { %v2262_v58 = vpack.c.bf16 %v1511_v51, %v1510_v50  ;;  %v1173_v59 = vadd.f32 %v1172_v53, %v1003_v52  ;;  %v926_v60 = vpop.f32.mrf.mxu0  ;;  %v2230_v50 = vld [vmem:[%s2818_s19 + $0x1c4] sm:$0xf0]  ;;  %v2197_v51 = vld [vmem:[%s2818_s19 + $0xc4] sm:$0xf]  ;;  %v1946_v52 = vld [vmem:[%s2818_s19 + $0xc8] sm:$0xf0] }
  0xe5   : > { %v1095_v62 = vpop.f32.mrf.mxu1  ;;  %v2229_v53 = vld [vmem:[%s2818_s19 + $0x1c4] sm:$0xf] }
  0xe6   : > { %2414 = vst [vmem:[%s2917_s27 + $0x8] sm:$0xff] %v2262_v58   ;;  %v1479_v0 = vadd.f32 %v2903_v63, %v1173_v59  ;;  %v1096_v4 = vadd.f32 %v1095_v62, %v926_v60  ;;  %v1945_v59 = vor.u32 %v2198_v46, %v1944_v45  ;;  %v2073_v60 = vor.u32 %v2230_v50, %v2072_v47  ;;  %v1960_v50 = vld [vmem:[%s2818_s19 + $0xe0] sm:$0xf] }
  0xe7   : > { %965 = vmatmul.bf16.gmra.mxu0 %v1929_v54  ;;  %1045 = vmatmul.bf16.gmra.mxu2 %v2057_v55  ;;  %v2074_v54 = vld [vmem:[%s2818_s19 + $0x1c8] sm:$0xf0] }
  0xe8   : > { %v1543_v2 = vmax.f32 %v1479_v0, 0.0  ;;  %1134 = vmatmul.bf16.gmra.mxu1 %v1933_v56  ;;  %1214 = vmatmul.bf16.gmra.mxu3 %v2061_v61  ;;  %v1448_v9 = vadd.f32 %v2903_v63, %v1096_v4  ;;  %v1949_v61 = vor.u32 %v2197_v51, %v1946_v52  ;;  %v2202_v51 = vld [vmem:[%s2818_s19 + $0xe4] sm:$0xf0]  ;;  %v2088_v52 = vld [vmem:[%s2818_s19 + $0x1e0] sm:$0xf] }
  0xea   : > { %v2342_v3 = vpack.c.bf16 %v1543_v2, %v1542_v1  ;;  %v1006_v5 = vpop.f32.mrf.mxu2  ;;  %v1512_v21 = vmax.f32 %v1448_v9, 0.0 }
  0xeb   : > { %v1175_v6 = vpop.f32.mrf.mxu3 }
  0xec   : > { %2430 = vst [vmem:[%s2917_s27 + $0x88] sm:$0xff] %v2342_v3   ;;  %v928_v7 = vpop.f32.mrf.mxu0  ;;  %v1176_v14 = vadd.f32 %v1175_v6, %v1006_v5  ;;  %v2077_v3 = vor.u32 %v2229_v53, %v2074_v54 }
  0xed   : > { %v1097_v8 = vpop.f32.mrf.mxu1 }
  0xee   : > { %v1098_v10 = vadd.f32 %v1097_v8, %v928_v7  ;;  %v1480_v28 = vadd.f32 %v2903_v63, %v1176_v14 }
  0xf0   : > { %v1449_v15 = vadd.f32 %v2903_v63, %v1098_v10  ;;  %v1544_v35 = vmax.f32 %v1480_v28, 0.0 }
  0xf2   : > { %v1513_v22 = vmax.f32 %v1449_v15, 0.0  ;;  %v1008_v23 = vpop.f32.mrf.mxu2 }
  0xf3   : > { %v1177_v24 = vpop.f32.mrf.mxu3 }
  0xf4   : > { %v2267_v29 = vpack.c.bf16 %v1513_v22, %v1512_v21  ;;  %v1178_v30 = vadd.f32 %v1177_v24, %v1008_v23  ;;  %v931_v31 = vpop.f32.mrf.mxu0  ;;  %v2232_v21 = vld [vmem:[%s2818_s19 + $0x1d4] sm:$0xf0]  ;;  %v2199_v22 = vld [vmem:[%s2818_s19 + $0xd4] sm:$0xf]  ;;  %v1954_v23 = vld [vmem:[%s2818_s19 + $0xd8] sm:$0xf0] }
  0xf5   : > { %v1100_v33 = vpop.f32.mrf.mxu1  ;;  %v2231_v24 = vld [vmem:[%s2818_s19 + $0x1d4] sm:$0xf] }
  0xf6   : > { %2415 = vst [vmem:[%s2917_s27 + $0x10] sm:$0xff] %v2267_v29   ;;  %v1481_v34 = vadd.f32 %v2903_v63, %v1178_v30  ;;  %v1101_v38 = vadd.f32 %v1100_v33, %v931_v31  ;;  %v1953_v30 = vor.u32 %v2200_v17, %v1952_v16  ;;  %v2081_v31 = vor.u32 %v2232_v21, %v2080_v18  ;;  %v1968_v21 = vld [vmem:[%s2818_s19 + $0xf0] sm:$0xf] }
  0xf7   : > { %970 = vmatmul.bf16.gmra.mxu0 %v1937_v25  ;;  %1050 = vmatmul.bf16.gmra.mxu2 %v2065_v26  ;;  %v2082_v25 = vld [vmem:[%s2818_s19 + $0x1d8] sm:$0xf0] }
  0xf8   : > { %v1545_v36 = vmax.f32 %v1481_v34, 0.0  ;;  %1139 = vmatmul.bf16.gmra.mxu1 %v1941_v27  ;;  %1219 = vmatmul.bf16.gmra.mxu3 %v2069_v32  ;;  %v1450_v43 = vadd.f32 %v2903_v63, %v1101_v38  ;;  %v1957_v32 = vor.u32 %v2199_v22, %v1954_v23  ;;  %v2204_v22 = vld [vmem:[%s2818_s19 + $0xf4] sm:$0xf0]  ;;  %v2096_v23 = vld [vmem:[%s2818_s19 + $0x1f0] sm:$0xf] }
  0xfa   : > { %v2347_v37 = vpack.c.bf16 %v1545_v36, %v1544_v35  ;;  %v1011_v39 = vpop.f32.mrf.mxu2  ;;  %v1514_v55 = vmax.f32 %v1450_v43, 0.0 }
  0xfb   : > { %v1180_v40 = vpop.f32.mrf.mxu3 }
  0xfc   : > { %2431 = vst [vmem:[%s2917_s27 + $0x90] sm:$0xff] %v2347_v37   ;;  %v933_v41 = vpop.f32.mrf.mxu0  ;;  %v1181_v48 = vadd.f32 %v1180_v40, %v1011_v39  ;;  %v2085_v37 = vor.u32 %v2231_v24, %v2082_v25 }
  0xfd   : > { %v1102_v42 = vpop.f32.mrf.mxu1 }
  0xfe   : > { %v1103_v44 = vadd.f32 %v1102_v42, %v933_v41  ;;  %v1482_v62 = vadd.f32 %v2903_v63, %v1181_v48 }
 0x100   : > { %v1451_v49 = vadd.f32 %v2903_v63, %v1103_v44  ;;  %v1546_v6 = vmax.f32 %v1482_v62, 0.0 }
 0x102   : > { %v1515_v56 = vmax.f32 %v1451_v49, 0.0  ;;  %v1013_v57 = vpop.f32.mrf.mxu2 }
 0x103   : > { %v1182_v58 = vpop.f32.mrf.mxu3 }
 0x104   : > { %v2272_v0 = vpack.c.bf16 %v1515_v56, %v1514_v55  ;;  %v1183_v1 = vadd.f32 %v1182_v58, %v1013_v57  ;;  %v936_v2 = vpop.f32.mrf.mxu0  ;;  %v2234_v55 = vld [vmem:[%s2818_s19 + $0x1e4] sm:$0xf0]  ;;  %v2201_v56 = vld [vmem:[%s2818_s19 + $0xe4] sm:$0xf]  ;;  %v1962_v57 = vld [vmem:[%s2818_s19 + $0xe8] sm:$0xf0] }
 0x105   : > { %v1105_v4 = vpop.f32.mrf.mxu1  ;;  %v2233_v58 = vld [vmem:[%s2818_s19 + $0x1e4] sm:$0xf] }
 0x106   : > { %2416 = vst [vmem:[%s2917_s27 + $0x18] sm:$0xff] %v2272_v0   ;;  %v1483_v5 = vadd.f32 %v2903_v63, %v1183_v1  ;;  %v1106_v9 = vadd.f32 %v1105_v4, %v936_v2  ;;  %v1961_v1 = vor.u32 %v2202_v51, %v1960_v50  ;;  %v2089_v2 = vor.u32 %v2234_v55, %v2088_v52 }
 0x107   : > { %975 = vmatmul.bf16.gmra.mxu0 %v1945_v59  ;;  %1055 = vmatmul.bf16.gmra.mxu2 %v2073_v60  ;;  %v2090_v59 = vld [vmem:[%s2818_s19 + $0x1e8] sm:$0xf0] }
 0x108   : > { %v1547_v7 = vmax.f32 %v1483_v5, 0.0  ;;  %1144 = vmatmul.bf16.gmra.mxu1 %v1949_v61  ;;  %1224 = vmatmul.bf16.gmra.mxu3 %v2077_v3  ;;  %v1452_v14 = vadd.f32 %v2903_v63, %v1106_v9  ;;  %v1965_v3 = vor.u32 %v2201_v56, %v1962_v57 }
 0x10a   : > { %v2352_v8 = vpack.c.bf16 %v1547_v7, %v1546_v6  ;;  %v1016_v10 = vpop.f32.mrf.mxu2  ;;  %v1516_v26 = vmax.f32 %v1452_v14, 0.0 }
 0x10b   : > { %v1185_v11 = vpop.f32.mrf.mxu3 }
 0x10c   : > { %2432 = vst [vmem:[%s2917_s27 + $0x98] sm:$0xff] %v2352_v8   ;;  %v938_v12 = vpop.f32.mrf.mxu0  ;;  %v1186_v19 = vadd.f32 %v1185_v11, %v1016_v10  ;;  %v2093_v8 = vor.u32 %v2233_v58, %v2090_v59 }
 0x10d   : > { %v1107_v13 = vpop.f32.mrf.mxu1 }
 0x10e   : > { %v1108_v15 = vadd.f32 %v1107_v13, %v938_v12  ;;  %v1484_v33 = vadd.f32 %v2903_v63, %v1186_v19 }
 0x110   : > { %v1453_v20 = vadd.f32 %v2903_v63, %v1108_v15  ;;  %v1548_v40 = vmax.f32 %v1484_v33, 0.0 }
 0x112   : > { %v1517_v27 = vmax.f32 %v1453_v20, 0.0  ;;  %v1018_v28 = vpop.f32.mrf.mxu2 }
 0x113   : > { %v1187_v29 = vpop.f32.mrf.mxu3 }
 0x114   : > { %v2277_v34 = vpack.c.bf16 %v1517_v27, %v1516_v26  ;;  %v1188_v35 = vadd.f32 %v1187_v29, %v1018_v28  ;;  %v941_v36 = vpop.f32.mrf.mxu0  ;;  %v2236_v26 = vld [vmem:[%s2818_s19 + $0x1f4] sm:$0xf0]  ;;  %v2203_v27 = vld [vmem:[%s2818_s19 + $0xf4] sm:$0xf]  ;;  %v1970_v28 = vld [vmem:[%s2818_s19 + $0xf8] sm:$0xf0] }
 0x115   : > { %v1110_v38 = vpop.f32.mrf.mxu1  ;;  %v2235_v29 = vld [vmem:[%s2818_s19 + $0x1f4] sm:$0xf] }
 0x116   : > { %2417 = vst [vmem:[%s2917_s27 + $0x20] sm:$0xff] %v2277_v34   ;;  %v1485_v39 = vadd.f32 %v2903_v63, %v1188_v35  ;;  %v1111_v43 = vadd.f32 %v1110_v38, %v941_v36  ;;  %v1969_v35 = vor.u32 %v2204_v22, %v1968_v21  ;;  %v2097_v36 = vor.u32 %v2236_v26, %v2096_v23 }
 0x117   : > { %980 = vmatmul.bf16.gmra.mxu0 %v1953_v30  ;;  %1060 = vmatmul.bf16.gmra.mxu2 %v2081_v31  ;;  %v2098_v30 = vld [vmem:[%s2818_s19 + $0x1f8] sm:$0xf0] }
 0x118   : > { %v1549_v41 = vmax.f32 %v1485_v39, 0.0  ;;  %1149 = vmatmul.bf16.gmra.mxu1 %v1957_v32  ;;  %1229 = vmatmul.bf16.gmra.mxu3 %v2085_v37  ;;  %v1454_v48 = vadd.f32 %v2903_v63, %v1111_v43  ;;  %v1973_v37 = vor.u32 %v2203_v27, %v1970_v28 }
 0x11a   : > { %v2357_v42 = vpack.c.bf16 %v1549_v41, %v1548_v40  ;;  %v1021_v44 = vpop.f32.mrf.mxu2  ;;  %v1518_v60 = vmax.f32 %v1454_v48, 0.0 }
 0x11b   : > { %v1190_v45 = vpop.f32.mrf.mxu3 }
 0x11c   : > { %2433 = vst [vmem:[%s2917_s27 + $0xa0] sm:$0xff] %v2357_v42   ;;  %v943_v46 = vpop.f32.mrf.mxu0  ;;  %v1191_v53 = vadd.f32 %v1190_v45, %v1021_v44  ;;  %v2101_v42 = vor.u32 %v2235_v29, %v2098_v30 }
 0x11d   : > { %v1112_v47 = vpop.f32.mrf.mxu1 }
 0x11e   : > { %v1113_v49 = vadd.f32 %v1112_v47, %v943_v46  ;;  %v1486_v4 = vadd.f32 %v2903_v63, %v1191_v53 }
 0x120   : > { %v1455_v54 = vadd.f32 %v2903_v63, %v1113_v49  ;;  %v1550_v11 = vmax.f32 %v1486_v4, 0.0 }
 0x122   : > { %v1519_v61 = vmax.f32 %v1455_v54, 0.0  ;;  %v1023_v62 = vpop.f32.mrf.mxu2 }
 0x123   : > { %v1192_v0 = vpop.f32.mrf.mxu3 }
 0x124   : > { %v2282_v5 = vpack.c.bf16 %v1519_v61, %v1518_v60  ;;  %v1193_v6 = vadd.f32 %v1192_v0, %v1023_v62  ;;  %v946_v7 = vpop.f32.mrf.mxu0 }
 0x125   : > { %v1115_v9 = vpop.f32.mrf.mxu1 }
 0x126   : > { %2418 = vst [vmem:[%s2917_s27 + $0x28] sm:$0xff] %v2282_v5   ;;  %v1487_v10 = vadd.f32 %v2903_v63, %v1193_v6  ;;  %v1116_v14 = vadd.f32 %v1115_v9, %v946_v7 }
 0x127   : > { %985 = vmatmul.bf16.gmra.mxu0 %v1961_v1  ;;  %1065 = vmatmul.bf16.gmra.mxu2 %v2089_v2 }
 0x128   : > { %v1551_v12 = vmax.f32 %v1487_v10, 0.0  ;;  %1154 = vmatmul.bf16.gmra.mxu1 %v1965_v3  ;;  %1234 = vmatmul.bf16.gmra.mxu3 %v2093_v8  ;;  %v1456_v19 = vadd.f32 %v2903_v63, %v1116_v14 }
 0x12a   : > { %v2362_v13 = vpack.c.bf16 %v1551_v12, %v1550_v11  ;;  %v1026_v15 = vpop.f32.mrf.mxu2  ;;  %v1520_v31 = vmax.f32 %v1456_v19, 0.0 }
 0x12b   : > { %v1195_v16 = vpop.f32.mrf.mxu3 }
 0x12c   : > { %2434 = vst [vmem:[%s2917_s27 + $0xa8] sm:$0xff] %v2362_v13   ;;  %v948_v17 = vpop.f32.mrf.mxu0  ;;  %v1196_v24 = vadd.f32 %v1195_v16, %v1026_v15 }
 0x12d   : > { %v1117_v18 = vpop.f32.mrf.mxu1 }
 0x12e   : > { %v1118_v20 = vadd.f32 %v1117_v18, %v948_v17  ;;  %v1488_v38 = vadd.f32 %v2903_v63, %v1196_v24 }
 0x130   : > { %v1457_v25 = vadd.f32 %v2903_v63, %v1118_v20  ;;  %v1552_v45 = vmax.f32 %v1488_v38, 0.0 }
 0x132   : > { %v1521_v32 = vmax.f32 %v1457_v25, 0.0  ;;  %v1028_v33 = vpop.f32.mrf.mxu2 }
 0x133   : > { %v1197_v34 = vpop.f32.mrf.mxu3 }
 0x134   : > { %v2287_v39 = vpack.c.bf16 %v1521_v32, %v1520_v31  ;;  %v1198_v40 = vadd.f32 %v1197_v34, %v1028_v33  ;;  %v951_v41 = vpop.f32.mrf.mxu0 }
 0x135   : > { %v1120_v43 = vpop.f32.mrf.mxu1 }
 0x136   : > { %2419 = vst [vmem:[%s2917_s27 + $0x30] sm:$0xff] %v2287_v39   ;;  %v1489_v44 = vadd.f32 %v2903_v63, %v1198_v40  ;;  %v1121_v48 = vadd.f32 %v1120_v43, %v951_v41 }
 0x137   : > { %990 = vmatmul.bf16.gmra.mxu0 %v1969_v35  ;;  %1070 = vmatmul.bf16.gmra.mxu2 %v2097_v36 }
 0x138   : > { %v1553_v46 = vmax.f32 %v1489_v44, 0.0  ;;  %1159 = vmatmul.bf16.gmra.mxu1 %v1973_v37  ;;  %1239 = vmatmul.bf16.gmra.mxu3 %v2101_v42  ;;  %v1458_v53 = vadd.f32 %v2903_v63, %v1121_v48 }
 0x13a   : > { %v2367_v47 = vpack.c.bf16 %v1553_v46, %v1552_v45  ;;  %v1031_v49 = vpop.f32.mrf.mxu2  ;;  %v1522_v57 = vmax.f32 %v1458_v53, 0.0 }
 0x13b   : > { %v1200_v50 = vpop.f32.mrf.mxu3 }
 0x13c   : > { %2435 = vst [vmem:[%s2917_s27 + $0xb0] sm:$0xff] %v2367_v47   ;;  %v953_v51 = vpop.f32.mrf.mxu0  ;;  %v1201_v55 = vadd.f32 %v1200_v50, %v1031_v49 }
 0x13d   : > { %v1122_v52 = vpop.f32.mrf.mxu1 }
 0x13e   : > { %v1123_v54 = vadd.f32 %v1122_v52, %v953_v51  ;;  %v1490_v61 = vadd.f32 %v2903_v63, %v1201_v55 }
 0x140   : > { %v1459_v56 = vadd.f32 %v2903_v63, %v1123_v54  ;;  %v1554_v4 = vmax.f32 %v1490_v61, 0.0 }
 0x142   : > { %v1523_v58 = vmax.f32 %v1459_v56, 0.0  ;;  %v1033_v59 = vpop.f32.mrf.mxu2 }
 0x143   : > { %v1202_v60 = vpop.f32.mrf.mxu3 }
 0x144   : > { %v2292_v62 = vpack.c.bf16 %v1523_v58, %v1522_v57  ;;  %v1203_v0 = vadd.f32 %v1202_v60, %v1033_v59  ;;  %v956_v1 = vpop.f32.mrf.mxu0 }
 0x145   : > { %v1125_v2 = vpop.f32.mrf.mxu1 }
 0x146   : > { %2420 = vst [vmem:[%s2917_s27 + $0x38] sm:$0xff] %v2292_v62   ;;  %v1491_v3 = vadd.f32 %v2903_v63, %v1203_v0  ;;  %v1126_v7 = vadd.f32 %v1125_v2, %v956_v1 }
 0x148   : > { %v1555_v5 = vmax.f32 %v1491_v3, 0.0  ;;  %v1460_v12 = vadd.f32 %v2903_v63, %v1126_v7 }
 0x14a   : > { %v2372_v6 = vpack.c.bf16 %v1555_v5, %v1554_v4  ;;  %v1036_v8 = vpop.f32.mrf.mxu2  ;;  %v1524_v16 = vmax.f32 %v1460_v12, 0.0 }
 0x14b   : > { %v1205_v9 = vpop.f32.mrf.mxu3 }
 0x14c   : > { %2436 = vst [vmem:[%s2917_s27 + $0xb8] sm:$0xff] %v2372_v6   ;;  %v958_v10 = vpop.f32.mrf.mxu0  ;;  %v1206_v14 = vadd.f32 %v1205_v9, %v1036_v8 }
 0x14d   : > { %v1127_v11 = vpop.f32.mrf.mxu1 }
 0x14e   : > { %v1128_v13 = vadd.f32 %v1127_v11, %v958_v10  ;;  %v1492_v20 = vadd.f32 %v2903_v63, %v1206_v14 }
 0x150   : > { %v1461_v15 = vadd.f32 %v2903_v63, %v1128_v13  ;;  %v1556_v26 = vmax.f32 %v1492_v20, 0.0 }
 0x152   : > { %v1525_v17 = vmax.f32 %v1461_v15, 0.0  ;;  %v1038_v18 = vpop.f32.mrf.mxu2 }
 0x153   : > { %v1207_v19 = vpop.f32.mrf.mxu3 }
 0x154   : > { %v2297_v21 = vpack.c.bf16 %v1525_v17, %v1524_v16  ;;  %v1208_v22 = vadd.f32 %v1207_v19, %v1038_v18  ;;  %v961_v23 = vpop.f32.mrf.mxu0 }
 0x155   : > { %v1130_v24 = vpop.f32.mrf.mxu1 }
 0x156   : > { %2421 = vst [vmem:[%s2917_s27 + $0x40] sm:$0xff] %v2297_v21   ;;  %v1493_v25 = vadd.f32 %v2903_v63, %v1208_v22  ;;  %v1131_v29 = vadd.f32 %v1130_v24, %v961_v23 }
 0x158   : > { %v1557_v27 = vmax.f32 %v1493_v25, 0.0  ;;  %v1462_v34 = vadd.f32 %v2903_v63, %v1131_v29 }
 0x15a   : > { %v2377_v28 = vpack.c.bf16 %v1557_v27, %v1556_v26  ;;  %v1041_v30 = vpop.f32.mrf.mxu2  ;;  %v1526_v38 = vmax.f32 %v1462_v34, 0.0 }
 0x15b   : > { %v1210_v31 = vpop.f32.mrf.mxu3 }
 0x15c   : > { %2437 = vst [vmem:[%s2917_s27 + $0xc0] sm:$0xff] %v2377_v28   ;;  %v963_v32 = vpop.f32.mrf.mxu0  ;;  %v1211_v36 = vadd.f32 %v1210_v31, %v1041_v30 }
 0x15d   : > { %v1132_v33 = vpop.f32.mrf.mxu1 }
 0x15e   : > { %v1133_v35 = vadd.f32 %v1132_v33, %v963_v32  ;;  %v1494_v42 = vadd.f32 %v2903_v63, %v1211_v36 }
 0x160   : > { %v1463_v37 = vadd.f32 %v2903_v63, %v1133_v35  ;;  %v1558_v48 = vmax.f32 %v1494_v42, 0.0 }
 0x162   : > { %v1527_v39 = vmax.f32 %v1463_v37, 0.0  ;;  %v1043_v40 = vpop.f32.mrf.mxu2 }
 0x163   : > { %v1212_v41 = vpop.f32.mrf.mxu3 }
 0x164   : > { %v2302_v43 = vpack.c.bf16 %v1527_v39, %v1526_v38  ;;  %v1213_v44 = vadd.f32 %v1212_v41, %v1043_v40  ;;  %v966_v45 = vpop.f32.mrf.mxu0 }
 0x165   : > { %v1135_v46 = vpop.f32.mrf.mxu1 }
 0x166   : > { %2422 = vst [vmem:[%s2917_s27 + $0x48] sm:$0xff] %v2302_v43   ;;  %v1495_v47 = vadd.f32 %v2903_v63, %v1213_v44  ;;  %v1136_v51 = vadd.f32 %v1135_v46, %v966_v45 }
 0x168   : > { %v1559_v49 = vmax.f32 %v1495_v47, 0.0  ;;  %v1464_v56 = vadd.f32 %v2903_v63, %v1136_v51 }
 0x16a   : > { %v2382_v50 = vpack.c.bf16 %v1559_v49, %v1558_v48  ;;  %v1046_v52 = vpop.f32.mrf.mxu2  ;;  %v1528_v60 = vmax.f32 %v1464_v56, 0.0 }
 0x16b   : > { %v1215_v53 = vpop.f32.mrf.mxu3 }
 0x16c   : > { %2438 = vst [vmem:[%s2917_s27 + $0xc8] sm:$0xff] %v2382_v50   ;;  %v968_v54 = vpop.f32.mrf.mxu0  ;;  %v1216_v58 = vadd.f32 %v1215_v53, %v1046_v52 }
 0x16d   : > { %v1137_v55 = vpop.f32.mrf.mxu1 }
 0x16e   : > { %v1138_v57 = vadd.f32 %v1137_v55, %v968_v54  ;;  %v1496_v1 = vadd.f32 %v2903_v63, %v1216_v58 }
 0x170   : > { %v1465_v59 = vadd.f32 %v2903_v63, %v1138_v57  ;;  %v1560_v7 = vmax.f32 %v1496_v1, 0.0 }
 0x172   : > { %v1529_v61 = vmax.f32 %v1465_v59, 0.0  ;;  %v1048_v62 = vpop.f32.mrf.mxu2 }
 0x173   : > { %v1217_v0 = vpop.f32.mrf.mxu3 }
 0x174   : > { %v2307_v2 = vpack.c.bf16 %v1529_v61, %v1528_v60  ;;  %v1218_v3 = vadd.f32 %v1217_v0, %v1048_v62  ;;  %v971_v4 = vpop.f32.mrf.mxu0 }
 0x175   : > { %v1140_v5 = vpop.f32.mrf.mxu1 }
 0x176   : > { %2423 = vst [vmem:[%s2917_s27 + $0x50] sm:$0xff] %v2307_v2   ;;  %v1497_v6 = vadd.f32 %v2903_v63, %v1218_v3  ;;  %v1141_v10 = vadd.f32 %v1140_v5, %v971_v4 }
 0x178   : > { %v1561_v8 = vmax.f32 %v1497_v6, 0.0  ;;  %v1466_v15 = vadd.f32 %v2903_v63, %v1141_v10 }
 0x17a   : > { %v2387_v9 = vpack.c.bf16 %v1561_v8, %v1560_v7  ;;  %v1051_v11 = vpop.f32.mrf.mxu2  ;;  %v1530_v19 = vmax.f32 %v1466_v15, 0.0 }
 0x17b   : > { %v1220_v12 = vpop.f32.mrf.mxu3 }
 0x17c   : > { %2439 = vst [vmem:[%s2917_s27 + $0xd0] sm:$0xff] %v2387_v9   ;;  %v973_v13 = vpop.f32.mrf.mxu0  ;;  %v1221_v17 = vadd.f32 %v1220_v12, %v1051_v11 }
 0x17d   : > { %v1142_v14 = vpop.f32.mrf.mxu1 }
 0x17e   : > { %v1143_v16 = vadd.f32 %v1142_v14, %v973_v13  ;;  %v1498_v23 = vadd.f32 %v2903_v63, %v1221_v17 }
 0x180   : > { %v1467_v18 = vadd.f32 %v2903_v63, %v1143_v16  ;;  %v1562_v29 = vmax.f32 %v1498_v23, 0.0 }
 0x182   : > { %v1531_v20 = vmax.f32 %v1467_v18, 0.0  ;;  %v1053_v21 = vpop.f32.mrf.mxu2 }
 0x183   : > { %v1222_v22 = vpop.f32.mrf.mxu3 }
 0x184   : > { %v2312_v24 = vpack.c.bf16 %v1531_v20, %v1530_v19  ;;  %v1223_v25 = vadd.f32 %v1222_v22, %v1053_v21  ;;  %v976_v26 = vpop.f32.mrf.mxu0 }
 0x185   : > { %v1145_v27 = vpop.f32.mrf.mxu1 }
 0x186   : > { %2424 = vst [vmem:[%s2917_s27 + $0x58] sm:$0xff] %v2312_v24   ;;  %v1499_v28 = vadd.f32 %v2903_v63, %v1223_v25  ;;  %v1146_v32 = vadd.f32 %v1145_v27, %v976_v26 }
 0x188   : > { %v1563_v30 = vmax.f32 %v1499_v28, 0.0  ;;  %v1468_v37 = vadd.f32 %v2903_v63, %v1146_v32 }
 0x18a   : > { %v2392_v31 = vpack.c.bf16 %v1563_v30, %v1562_v29  ;;  %v1056_v33 = vpop.f32.mrf.mxu2  ;;  %v1532_v41 = vmax.f32 %v1468_v37, 0.0 }
 0x18b   : > { %v1225_v34 = vpop.f32.mrf.mxu3 }
 0x18c   : > { %2440 = vst [vmem:[%s2917_s27 + $0xd8] sm:$0xff] %v2392_v31   ;;  %v978_v35 = vpop.f32.mrf.mxu0  ;;  %v1226_v39 = vadd.f32 %v1225_v34, %v1056_v33 }
 0x18d   : > { %v1147_v36 = vpop.f32.mrf.mxu1 }
 0x18e   : > { %v1148_v38 = vadd.f32 %v1147_v36, %v978_v35  ;;  %v1500_v45 = vadd.f32 %v2903_v63, %v1226_v39 }
 0x190   : > { %v1469_v40 = vadd.f32 %v2903_v63, %v1148_v38  ;;  %v1564_v51 = vmax.f32 %v1500_v45, 0.0 }
 0x192   : > { %v1533_v42 = vmax.f32 %v1469_v40, 0.0  ;;  %v1058_v43 = vpop.f32.mrf.mxu2 }
 0x193   : > { %v1227_v44 = vpop.f32.mrf.mxu3 }
 0x194   : > { %v2317_v46 = vpack.c.bf16 %v1533_v42, %v1532_v41  ;;  %v1228_v47 = vadd.f32 %v1227_v44, %v1058_v43  ;;  %v981_v48 = vpop.f32.mrf.mxu0 }
 0x195   : > { %v1150_v49 = vpop.f32.mrf.mxu1 }
 0x196   : > { %2425 = vst [vmem:[%s2917_s27 + $0x60] sm:$0xff] %v2317_v46   ;;  %v1501_v50 = vadd.f32 %v2903_v63, %v1228_v47  ;;  %v1151_v54 = vadd.f32 %v1150_v49, %v981_v48 }
 0x198   : > { %v1565_v52 = vmax.f32 %v1501_v50, 0.0  ;;  %v1470_v59 = vadd.f32 %v2903_v63, %v1151_v54 }
 0x19a   : > { %v2397_v53 = vpack.c.bf16 %v1565_v52, %v1564_v51  ;;  %v1061_v55 = vpop.f32.mrf.mxu2  ;;  %v1534_v0 = vmax.f32 %v1470_v59, 0.0 }
 0x19b   : > { %v1230_v56 = vpop.f32.mrf.mxu3 }
 0x19c   : > { %2441 = vst [vmem:[%s2917_s27 + $0xe0] sm:$0xff] %v2397_v53   ;;  %v983_v57 = vpop.f32.mrf.mxu0  ;;  %v1231_v61 = vadd.f32 %v1230_v56, %v1061_v55 }
 0x19d   : > { %v1152_v58 = vpop.f32.mrf.mxu1 }
 0x19e   : > { %v1153_v60 = vadd.f32 %v1152_v58, %v983_v57  ;;  %v1502_v4 = vadd.f32 %v2903_v63, %v1231_v61 }
 0x1a0   : > { %v1471_v62 = vadd.f32 %v2903_v63, %v1153_v60  ;;  %v1566_v10 = vmax.f32 %v1502_v4, 0.0 }
 0x1a2   : > { %v1535_v1 = vmax.f32 %v1471_v62, 0.0  ;;  %v1063_v2 = vpop.f32.mrf.mxu2 }
 0x1a3   : > { %v1232_v3 = vpop.f32.mrf.mxu3 }
 0x1a4   : > { %v2322_v5 = vpack.c.bf16 %v1535_v1, %v1534_v0  ;;  %v1233_v6 = vadd.f32 %v1232_v3, %v1063_v2  ;;  %v986_v7 = vpop.f32.mrf.mxu0 }
 0x1a5   : > { %v1155_v8 = vpop.f32.mrf.mxu1 }
 0x1a6   : > { %2426 = vst [vmem:[%s2917_s27 + $0x68] sm:$0xff] %v2322_v5   ;;  %v1503_v9 = vadd.f32 %v2903_v63, %v1233_v6  ;;  %v1156_v13 = vadd.f32 %v1155_v8, %v986_v7 }
 0x1a8   : > { %v1567_v11 = vmax.f32 %v1503_v9, 0.0  ;;  %v1472_v18 = vadd.f32 %v2903_v63, %v1156_v13 }
 0x1aa   : > { %v2402_v12 = vpack.c.bf16 %v1567_v11, %v1566_v10  ;;  %v1066_v14 = vpop.f32.mrf.mxu2  ;;  %v1536_v22 = vmax.f32 %v1472_v18, 0.0 }
 0x1ab   : > { %v1235_v15 = vpop.f32.mrf.mxu3 }
 0x1ac   : > { %2442 = vst [vmem:[%s2917_s27 + $0xe8] sm:$0xff] %v2402_v12   ;;  %v988_v16 = vpop.f32.mrf.mxu0  ;;  %v1236_v20 = vadd.f32 %v1235_v15, %v1066_v14 }
 0x1ad   : > { %v1157_v17 = vpop.f32.mrf.mxu1 }
 0x1ae   : > { %v1158_v19 = vadd.f32 %v1157_v17, %v988_v16  ;;  %v1504_v26 = vadd.f32 %v2903_v63, %v1236_v20 }
 0x1b0   : > { %v1473_v21 = vadd.f32 %v2903_v63, %v1158_v19  ;;  %v1568_v32 = vmax.f32 %v1504_v26, 0.0 }
 0x1b2   : > { %v1537_v23 = vmax.f32 %v1473_v21, 0.0  ;;  %v1068_v24 = vpop.f32.mrf.mxu2 }
 0x1b3   : > { %v1237_v25 = vpop.f32.mrf.mxu3 }
 0x1b4   : > { %v2327_v27 = vpack.c.bf16 %v1537_v23, %v1536_v22  ;;  %v1238_v28 = vadd.f32 %v1237_v25, %v1068_v24  ;;  %v991_v29 = vpop.f32.mrf.mxu0 }
 0x1b5   : > { %v1160_v30 = vpop.f32.mrf.mxu1 }
 0x1b6   : > { %2427 = vst [vmem:[%s2917_s27 + $0x70] sm:$0xff] %v2327_v27   ;;  %v1505_v31 = vadd.f32 %v2903_v63, %v1238_v28  ;;  %v1161_v35 = vadd.f32 %v1160_v30, %v991_v29 }
 0x1b8   : > { %v1569_v33 = vmax.f32 %v1505_v31, 0.0  ;;  %v1474_v40 = vadd.f32 %v2903_v63, %v1161_v35 }
 0x1ba   : > { %v2407_v34 = vpack.c.bf16 %v1569_v33, %v1568_v32  ;;  %v1071_v36 = vpop.f32.mrf.mxu2  ;;  %v1538_v44 = vmax.f32 %v1474_v40, 0.0 }
 0x1bb   : > { %v1240_v37 = vpop.f32.mrf.mxu3 }
 0x1bc   : > { %2443 = vst [vmem:[%s2917_s27 + $0xf0] sm:$0xff] %v2407_v34   ;;  %v993_v38 = vpop.f32.mrf.mxu0  ;;  %v1241_v42 = vadd.f32 %v1240_v37, %v1071_v36 }
 0x1bd   : > { %v1162_v39 = vpop.f32.mrf.mxu1 }
 0x1be   : > { %v1163_v41 = vadd.f32 %v1162_v39, %v993_v38  ;;  %v1506_v48 = vadd.f32 %v2903_v63, %v1241_v42 }
 0x1c0   : > { %v1475_v43 = vadd.f32 %v2903_v63, %v1163_v41  ;;  %v1570_v52 = vmax.f32 %v1506_v48, 0.0 }
 0x1c2   : > { %v1539_v45 = vmax.f32 %v1475_v43, 0.0  ;;  %v1073_v46 = vpop.f32.mrf.mxu2 }
 0x1c3   : > { %v1242_v47 = vpop.f32.mrf.mxu3 }
 0x1c4   : > { %v2332_v49 = vpack.c.bf16 %v1539_v45, %v1538_v44  ;;  %v1243_v50 = vadd.f32 %v1242_v47, %v1073_v46 }
 0x1c6   : > { %2428 = vst [vmem:[%s2917_s27 + $0x78] sm:$0xff] %v2332_v49   ;;  %v1507_v51 = vadd.f32 %v2903_v63, %v1243_v50 }
 0x1c8   : > { %v1571_v53 = vmax.f32 %v1507_v51, 0.0 }
 0x1ca   : > { %v2412_v54 = vpack.c.bf16 %v1571_v53, %v1570_v52 }
 0x1cc   : > { %2444 = vst [vmem:[%s2917_s27 + $0xf8] sm:$0xff] %v2412_v54  }
 0x1cd   : > { %2628 = shalt.err (!%p2625_p12)
}
 0x1ce   : > { %s2694_s6 = smov 64   ;;  %s2695_s1 = smov 4  }
 0x1cf   : > { %2467 = dma.vmem_to_hbm [thread:$0]  (%p2794_p3), %s1715_s26, 4096, %s1717_s15, %s1701_s28, %s2694_s6, %s2694_s6, %s2695_s1  }
 0x1d0 PF: > { %p2484_p13 = scmp.ge.s32.totalorder %s2687_s17, 2  ;;  %s1731_s20 = sand.u32 1, %s2667_s12  }
 0x1d1   : > { %s1732_s22 = scalar_lea.sflag [#allocation5], %s1731_s20 }
 0x1d2   : > { %p2478_p0 = pnand %p2484_p13, %p2765_p6 }
 0x1d4   : > { %p2479_p5 = pneg %p2478_p0 }
 0x1d6   : > { %2662 = dma.done.wait (%p2479_p5), %s1732_s22, 4096  }
 0x1d7   : > { %2664 = vsyncadd (%p2479_p5), %s1732_s22, 4294963200  ;;  %s20_s17 = sadd.s32 1, %s2687_s17   ;;  %s3111_s12 = smov %s2671_s13 }
 0x1d8   : > { %p17_p7 = scmp.ge.s32.totalorder %s20_s17, 6   ;;  %s3112_s13 = smov %s2675_s14 }
 0x1d9   : > { %s3113_s14 = smov %s2803_s18  ;;  %s3114_s15 = smov %s2683_s16 }
 0x1da   : > { %s3115_s16 = smov %s3117_s5  ;;  %19 = sbr.rel (!%p17_p7) target bundleno = 9 (0x9), region = 93 }
 0x1df   :  { %1738 = vsyncpa [#allocation4], 1 }
 0x1e0   :  { %1740 = vsyncpa [#allocation4 + $0x1], 1 }
 0x1e1   :  { %1741 = vsyncpa [#allocation7], 1 }
 0x1e2   :  { %1742 = vsyncpa [#allocation5], 1 }
 0x1e3   :  { %1744 = vsyncpa [#allocation5 + $0x1], 1 }

</bundles_post_ra>
